<compile_context>
chip_gen: v5e
topology: v5e:2x2
jax: 0.10.0
libtpu: 0.0.40
codegen_flags: <defaults>
</compile_context>

<pallas_src>
import functools

import jax
import jax.numpy as jnp
from jax.experimental import pallas as pl
from jax.experimental.pallas import tpu as pltpu

EPS = 1e-6
_VMEM_LIMIT = 48 * 1024 * 1024  # < 64 MiB physical VMEM on v7x, ample on v5e/v6e


def _round_up(a, b):
    return (a + b - 1) // b * b


def _matmul_stats_kernel(a_ref, w_ref, y_ref, sum_ref, ssq_ref):
    """Per (n, m-tile): y = W @ A_T (f32 acc); accumulate per-channel sum/sum(y^2)."""
    first = (pl.program_id(0) == 0) & (pl.program_id(1) == 0)
    y = jnp.dot(w_ref[...], a_ref[...], preferred_element_type=jnp.float32)
    y_ref[...] = y.astype(y_ref.dtype)

    @pl.when(first)
    def _init():
        sum_ref[...] = jnp.zeros_like(sum_ref)
        ssq_ref[...] = jnp.zeros_like(ssq_ref)

    sum_ref[...] += jnp.sum(y, axis=1, keepdims=True)
    ssq_ref[...] += jnp.sum(y * y, axis=1, keepdims=True)


def _bn_apply_kernel(y_ref, scale_ref, shift_ref, o_ref):
    """Per (n, m-tile): o = y * scale + shift (scale/shift fold mean/var/gamma/beta)."""
    y = y_ref[...].astype(jnp.float32)
    o_ref[...] = (y * scale_ref[...] + shift_ref[...]).astype(o_ref.dtype)


@functools.partial(jax.jit, static_argnames=("tm",))
def convnext_downsampling(x, conv_w, gamma, beta, *, tm=512):
    """x: (N, C_in, H, W) NCHW; conv_w: (C_out, C_in, 2, 2) OIHW; gamma/beta: (C_out,)."""
    N, Cin, H, W = x.shape
    Cout = conv_w.shape[0]
    assert H % 2 == 0 and W % 2 == 0, "k=2, s=2 conv needs even spatial dims"
    Ho, Wo = H // 2, W // 2
    Mo = Ho * Wo                       # spatial positions per image (lane axis)
    M = N * Mo                         # true element count per channel (for stats)
    K = Cin * 4                        # contraction dim (ci, kh, kw)

    dt = x.dtype
    co_p = _round_up(Cout, 8)                      # channels -> sublane multiple of 8
    tm_eff = min(tm, _round_up(Mo, 128))           # spatial tile, lane multiple of 128
    mo_p = _round_up(Mo, tm_eff)
    n_mt = mo_p // tm_eff

    # --- im2col (transposed; layout glue only, stays in the input dtype) -------
    # TODO(synk): fold the 2x2 patch gather into the kernel via a 4-D BlockSpec
    # over x to avoid this extra XLA pass over the input.
    xr = x.reshape(N, Cin, Ho, 2, Wo, 2)
    a_t = jnp.transpose(xr, (0, 1, 3, 5, 2, 4)).reshape(N, K, Mo)   # (N, K, Ho*Wo)
    a_t = jnp.pad(a_t, ((0, 0), (0, 0), (0, mo_p - Mo)))
    w_t = jnp.pad(conv_w.reshape(Cout, K).astype(dt), ((0, co_p - Cout), (0, 0)))

    # --- pass 1: tiled matmul + per-channel sum / sum-of-squares ---------------
    y, ysum, yssq = pl.pallas_call(
        _matmul_stats_kernel,
        out_shape=(
            jax.ShapeDtypeStruct((N, co_p, mo_p), dt),
            jax.ShapeDtypeStruct((co_p, 1), jnp.float32),
            jax.ShapeDtypeStruct((co_p, 1), jnp.float32),
        ),
        grid=(N, n_mt),
        in_specs=[
            pl.BlockSpec((None, K, tm_eff), lambda n, j: (n, 0, j)),
            pl.BlockSpec((co_p, K), lambda n, j: (0, 0)),
        ],
        out_specs=(
            pl.BlockSpec((None, co_p, tm_eff), lambda n, j: (n, 0, j)),
            pl.BlockSpec((co_p, 1), lambda n, j: (0, 0)),
            pl.BlockSpec((co_p, 1), lambda n, j: (0, 0)),
        ),
        compiler_params=pltpu.CompilerParams(
            dimension_semantics=("arbitrary", "arbitrary"),  # carries the stats acc
            vmem_limit_bytes=_VMEM_LIMIT,
        ),
    )(a_t, w_t)

    # --- fold BN (tiny (Cout_p, 1) arithmetic, done once, all f32) -------------
    mean = ysum / M                                # padded rows/cols are zero -> inert
    var = yssq / M - mean * mean                   # biased (train-mode) variance
    inv = jax.lax.rsqrt(var + EPS)
    gamma_p = jnp.pad(gamma.astype(jnp.float32), (0, co_p - Cout)).reshape(co_p, 1)
    beta_p = jnp.pad(beta.astype(jnp.float32), (0, co_p - Cout)).reshape(co_p, 1)
    scale = gamma_p * inv
    shift = beta_p - mean * scale

    # --- pass 2: normalize y in place, tiled + parallel over (N, spatial) ------
    z = pl.pallas_call(
        _bn_apply_kernel,
        out_shape=jax.ShapeDtypeStruct((N, co_p, mo_p), dt),
        grid=(N, n_mt),
        in_specs=[
            pl.BlockSpec((None, co_p, tm_eff), lambda n, j: (n, 0, j)),
            pl.BlockSpec((co_p, 1), lambda n, j: (0, 0)),
            pl.BlockSpec((co_p, 1), lambda n, j: (0, 0)),
        ],
        out_specs=pl.BlockSpec((None, co_p, tm_eff), lambda n, j: (n, 0, j)),
        input_output_aliases={0: 0},               # reuse y's buffer for the output
        compiler_params=pltpu.CompilerParams(
            dimension_semantics=("parallel", "parallel"),  # megacore-shardable on v7x
            vmem_limit_bytes=_VMEM_LIMIT,
        ),
    )(y, scale, shift)

    # Output is already NCHW-ordered: just drop padding and reshape (no transpose).
    if co_p != Cout or mo_p != Mo:
        z = z[:, :Cout, :Mo]
    return z.reshape(N, Cout, Ho, Wo)


def reference(x, conv_w, gamma, beta):
    y = jax.lax.conv_general_dilated(
        x, conv_w, window_strides=(2, 2), padding="VALID",
        dimension_numbers=("NCHW", "OIHW", "NCHW"))
    mean = jnp.mean(y, axis=(0, 2, 3), keepdims=True)
    var = jnp.mean((y - mean) ** 2, axis=(0, 2, 3), keepdims=True)
    yh = (y - mean) * jax.lax.rsqrt(var + EPS)
    return yh * gamma.reshape(1, -1, 1, 1) + beta.reshape(1, -1, 1, 1)


if __name__ == "__main__":
    key = jax.random.PRNGKey(0)
    kx, kw, kg, kb = jax.random.split(key, 4)

    N, Cin, H, W = 2, 4, 16, 16
    Cout = 8

    x = jax.random.normal(kx, (N, Cin, H, W), dtype=jnp.float32)
    conv_w = jax.random.normal(kw, (Cout, Cin, 2, 2), dtype=jnp.float32) * 0.1
    gamma = jax.random.normal(kg, (Cout,), dtype=jnp.float32) * 0.1 + 1.0
    beta = jax.random.normal(kb, (Cout,), dtype=jnp.float32) * 0.1

    # tm=128 -> grid (N=2, 1) at this toy size; the stats accumulator is carried
    # across the two batch iterations, exercising the reduction path.
    out = jax.block_until_ready(convnext_downsampling(x, conv_w, gamma, beta, tm=128))
    ref = jax.block_until_ready(reference(x, conv_w, gamma, beta))

    assert out.shape == (N, Cout, H // 2, W // 2), out.shape
    max_err = float(jnp.max(jnp.abs(out - ref)))
    assert jnp.allclose(out, ref, atol=1e-4, rtol=1e-4), max_err

    print("KERNEL_OK")
</pallas_src>

<mosaic_0001>
module attributes {stable_mosaic.version = 11 : i64} {
  func.func @_matmul_stats_kernel(%arg0: i32, %arg1: i32, %arg2: memref<1x16x128xf32, #tpu.memory_space<vmem>>, %arg3: memref<8x16xf32, #tpu.memory_space<vmem>>, %arg4: memref<1x8x128xf32, #tpu.memory_space<vmem>>, %arg5: memref<8x1xf32, #tpu.memory_space<vmem>>, %arg6: memref<8x1xf32, #tpu.memory_space<vmem>>) attributes {dimension_semantics = [#tpu.dimension_semantics<arbitrary>, #tpu.dimension_semantics<arbitrary>], iteration_bounds = array<i64: 2, 1>, scalar_prefetch = 0 : i64, scratch_operands = 0 : i64, tpu.core_type = #tpu.core_type<tc>, window_params = [{transform_indices = @transform_0, window_bounds = array<i64: 1, 16, 128>}, {pipeline_mode = #tpu.pipeline_mode<synchronous>, transform_indices = @transform_1, window_bounds = array<i64: 8, 16>}, {transform_indices = @transform_2, window_bounds = array<i64: 1, 8, 128>}, {pipeline_mode = #tpu.pipeline_mode<synchronous>, transform_indices = @transform_3, window_bounds = array<i64: 8, 1>}, {pipeline_mode = #tpu.pipeline_mode<synchronous>, transform_indices = @transform_4, window_bounds = array<i64: 8, 1>}]} {
    %c0_i32 = arith.constant 0 : i32
    %0 = arith.cmpi eq, %arg0, %c0_i32 : i32
    %c0_i32_0 = arith.constant 0 : i32
    %1 = arith.cmpi eq, %arg1, %c0_i32_0 : i32
    %2 = arith.andi %0, %1 : i1
    %c0 = arith.constant 0 : index
    %c0_1 = arith.constant 0 : index
    %3 = vector.load %arg3[%c0, %c0_1] : memref<8x16xf32, #tpu.memory_space<vmem>>, vector<8x16xf32>
    %c0_2 = arith.constant 0 : index
    %c0_3 = arith.constant 0 : index
    %c0_4 = arith.constant 0 : index
    %4 = vector.load %arg2[%c0_2, %c0_3, %c0_4] : memref<1x16x128xf32, #tpu.memory_space<vmem>>, vector<1x16x128xf32>
    %5 = vector.shape_cast %4 : vector<1x16x128xf32> to vector<16x128xf32>
    %cst = arith.constant dense<0.000000e+00> : vector<8x128xf32>
    %6 = tpu.matmul %3, %5, %cst {dimension_numbers = #tpu.dot_dimension_numbers<[1], [0], [0], [1], [0, 0, 1, 1], [], []>} : vector<8x16xf32>, vector<16x128xf32>, vector<8x128xf32> -> vector<8x128xf32>
    %c0_5 = arith.constant 0 : index
    %c0_6 = arith.constant 0 : index
    %c0_7 = arith.constant 0 : index
    %7 = vector.load %arg4[%c0_5, %c0_6, %c0_7] : memref<1x8x128xf32, #tpu.memory_space<vmem>>, vector<1x8x128xf32>
    %8 = vector.shape_cast %7 : vector<1x8x128xf32> to vector<8x128xf32>
    %9 = vector.shape_cast %6 : vector<8x128xf32> to vector<1x8x128xf32>
    tpu.vector_store %arg4[%c0_5, %c0_6, %c0_7], %9 {strides = array<i32>} : memref<1x8x128xf32, #tpu.memory_space<vmem>>, vector<1x8x128xf32>,
    %10 = arith.extui %2 : i1 to i32
    %c0_i32_8 = arith.constant 0 : i32
    %11 = arith.cmpi ne, %10, %c0_i32_8 : i32
    scf.if %11 {
      %cst_19 = arith.constant 0.000000e+00 : f32
      %23 = vector.broadcast %cst_19 : f32 to vector<8x1xf32>
      %c0_20 = arith.constant 0 : index
      %c0_21 = arith.constant 0 : index
      %24 = vector.load %arg5[%c0_20, %c0_21] : memref<8x1xf32, #tpu.memory_space<vmem>>, vector<8x1xf32>
      tpu.vector_store %arg5[%c0_20, %c0_21], %23 {strides = array<i32>} : memref<8x1xf32, #tpu.memory_space<vmem>>, vector<8x1xf32>,
      %cst_22 = arith.constant 0.000000e+00 : f32
      %25 = vector.broadcast %cst_22 : f32 to vector<8x1xf32>
      %c0_23 = arith.constant 0 : index
      %c0_24 = arith.constant 0 : index
      %26 = vector.load %arg6[%c0_23, %c0_24] : memref<8x1xf32, #tpu.memory_space<vmem>>, vector<8x1xf32>
      tpu.vector_store %arg6[%c0_23, %c0_24], %25 {strides = array<i32>} : memref<8x1xf32, #tpu.memory_space<vmem>>, vector<8x1xf32>,
    } else {
    }
    %c0_9 = arith.constant 0 : index
    %c0_10 = arith.constant 0 : index
    %12 = vector.load %arg5[%c0_9, %c0_10] : memref<8x1xf32, #tpu.memory_space<vmem>>, vector<8x1xf32>
    %cst_11 = arith.constant dense<0.000000e+00> : vector<8xf32>
    %13 = vector.multi_reduction <add>, %6, %cst_11 [1] : vector<8x128xf32> to vector<8xf32>
    %14 = vector.shape_cast %13 : vector<8xf32> to vector<8x1xf32>
    %15 = arith.addf %12, %14 : vector<8x1xf32>
    %c0_12 = arith.constant 0 : index
    %c0_13 = arith.constant 0 : index
    %16 = vector.load %arg5[%c0_12, %c0_13] : memref<8x1xf32, #tpu.memory_space<vmem>>, vector<8x1xf32>
    tpu.vector_store %arg5[%c0_12, %c0_13], %15 {strides = array<i32>} : memref<8x1xf32, #tpu.memory_space<vmem>>, vector<8x1xf32>,
    %c0_14 = arith.constant 0 : index
    %c0_15 = arith.constant 0 : index
    %17 = vector.load %arg6[%c0_14, %c0_15] : memref<8x1xf32, #tpu.memory_space<vmem>>, vector<8x1xf32>
    %18 = arith.mulf %6, %6 : vector<8x128xf32>
    %cst_16 = arith.constant dense<0.000000e+00> : vector<8xf32>
    %19 = vector.multi_reduction <add>, %18, %cst_16 [1] : vector<8x128xf32> to vector<8xf32>
    %20 = vector.shape_cast %19 : vector<8xf32> to vector<8x1xf32>
    %21 = arith.addf %17, %20 : vector<8x1xf32>
    %c0_17 = arith.constant 0 : index
    %c0_18 = arith.constant 0 : index
    %22 = vector.load %arg6[%c0_17, %c0_18] : memref<8x1xf32, #tpu.memory_space<vmem>>, vector<8x1xf32>
    tpu.vector_store %arg6[%c0_17, %c0_18], %21 {strides = array<i32>} : memref<8x1xf32, #tpu.memory_space<vmem>>, vector<8x1xf32>,
    return
  }
  func.func @transform_0(%arg0: i32, %arg1: i32) -> (i32, i32, i32) {
    %c0_i32 = arith.constant 0 : i32
    %c0_i32_0 = arith.constant 0 : i32
    return %arg0, %c0_i32, %arg1 : i32, i32, i32
  }
  func.func @transform_1(%arg0: i32, %arg1: i32) -> (i32, i32) {
    %c0_i32 = arith.constant 0 : i32
    %c0_i32_0 = arith.constant 0 : i32
    %c0_i32_1 = arith.constant 0 : i32
    return %c0_i32, %c0_i32_0 : i32, i32
  }
  func.func @transform_2(%arg0: i32, %arg1: i32) -> (i32, i32, i32) {
    %c0_i32 = arith.constant 0 : i32
    %c0_i32_0 = arith.constant 0 : i32
    return %arg0, %c0_i32, %arg1 : i32, i32, i32
  }
  func.func @transform_3(%arg0: i32, %arg1: i32) -> (i32, i32) {
    %c0_i32 = arith.constant 0 : i32
    %c0_i32_0 = arith.constant 0 : i32
    %c0_i32_1 = arith.constant 0 : i32
    return %c0_i32, %c0_i32_0 : i32, i32
  }
  func.func @transform_4(%arg0: i32, %arg1: i32) -> (i32, i32) {
    %c0_i32 = arith.constant 0 : i32
    %c0_i32_0 = arith.constant 0 : i32
    %c0_i32_1 = arith.constant 0 : i32
    return %c0_i32, %c0_i32_0 : i32, i32
  }
}

module attributes {stable_mosaic.version = 11 : i64} {
  func.func @_bn_apply_kernel(%arg0: i32, %arg1: i32, %arg2: memref<1x8x128xf32, #tpu.memory_space<vmem>>, %arg3: memref<8x1xf32, #tpu.memory_space<vmem>>, %arg4: memref<8x1xf32, #tpu.memory_space<vmem>>, %arg5: memref<1x8x128xf32, #tpu.memory_space<vmem>>) attributes {dimension_semantics = [#tpu.dimension_semantics<parallel>, #tpu.dimension_semantics<parallel>], iteration_bounds = array<i64: 2, 1>, scalar_prefetch = 0 : i64, scratch_operands = 0 : i64, tpu.core_type = #tpu.core_type<tc>, window_params = [{transform_indices = @transform_0, window_bounds = array<i64: 1, 8, 128>}, {pipeline_mode = #tpu.pipeline_mode<synchronous>, transform_indices = @transform_1, window_bounds = array<i64: 8, 1>}, {pipeline_mode = #tpu.pipeline_mode<synchronous>, transform_indices = @transform_2, window_bounds = array<i64: 8, 1>}, {transform_indices = @transform_3, window_bounds = array<i64: 1, 8, 128>}]} {
    %c0 = arith.constant 0 : index
    %c0_0 = arith.constant 0 : index
    %c0_1 = arith.constant 0 : index
    %0 = vector.load %arg2[%c0, %c0_0, %c0_1] : memref<1x8x128xf32, #tpu.memory_space<vmem>>, vector<1x8x128xf32>
    %1 = vector.shape_cast %0 : vector<1x8x128xf32> to vector<8x128xf32>
    %c0_2 = arith.constant 0 : index
    %c0_3 = arith.constant 0 : index
    %2 = vector.load %arg3[%c0_2, %c0_3] : memref<8x1xf32, #tpu.memory_space<vmem>>, vector<8x1xf32>
    %3 = vector.broadcast %2 : vector<8x1xf32> to vector<8x128xf32>
    %4 = arith.mulf %1, %3 : vector<8x128xf32>
    %c0_4 = arith.constant 0 : index
    %c0_5 = arith.constant 0 : index
    %5 = vector.load %arg4[%c0_4, %c0_5] : memref<8x1xf32, #tpu.memory_space<vmem>>, vector<8x1xf32>
    %6 = vector.broadcast %5 : vector<8x1xf32> to vector<8x128xf32>
    %7 = arith.addf %4, %6 : vector<8x128xf32>
    %c0_6 = arith.constant 0 : index
    %c0_7 = arith.constant 0 : index
    %c0_8 = arith.constant 0 : index
    %8 = vector.load %arg5[%c0_6, %c0_7, %c0_8] : memref<1x8x128xf32, #tpu.memory_space<vmem>>, vector<1x8x128xf32>
    %9 = vector.shape_cast %8 : vector<1x8x128xf32> to vector<8x128xf32>
    %10 = vector.shape_cast %7 : vector<8x128xf32> to vector<1x8x128xf32>
    tpu.vector_store %arg5[%c0_6, %c0_7, %c0_8], %10 {strides = array<i32>} : memref<1x8x128xf32, #tpu.memory_space<vmem>>, vector<1x8x128xf32>,
    return
  }
  func.func @transform_0(%arg0: i32, %arg1: i32) -> (i32, i32, i32) {
    %c0_i32 = arith.constant 0 : i32
    %c0_i32_0 = arith.constant 0 : i32
    return %arg0, %c0_i32, %arg1 : i32, i32, i32
  }
  func.func @transform_1(%arg0: i32, %arg1: i32) -> (i32, i32) {
    %c0_i32 = arith.constant 0 : i32
    %c0_i32_0 = arith.constant 0 : i32
    %c0_i32_1 = arith.constant 0 : i32
    return %c0_i32, %c0_i32_0 : i32, i32
  }
  func.func @transform_2(%arg0: i32, %arg1: i32) -> (i32, i32) {
    %c0_i32 = arith.constant 0 : i32
    %c0_i32_0 = arith.constant 0 : i32
    %c0_i32_1 = arith.constant 0 : i32
    return %c0_i32, %c0_i32_0 : i32, i32
  }
  func.func @transform_3(%arg0: i32, %arg1: i32) -> (i32, i32, i32) {
    %c0_i32 = arith.constant 0 : i32
    %c0_i32_0 = arith.constant 0 : i32
    return %arg0, %c0_i32, %arg1 : i32, i32, i32
  }
}

</mosaic_0001>

<bundles_post_ra>
// kernel: convnext_downsampling.3
= control target key start
LH: loop header
LB: loop body
LE: loop exit
PB: predicated region body
PF: predicated region fallthrough
CT: control target
= control target key end

     0   :  { %s367_s12 = smov 0   ;;  %s369_s13 = smov 0   ;;  %s399_s0 = inlined_call_operand.vmem [shape: f32[2,8,128], index: 0, kind: input, shape index: {}, may-alias: {0,3}]   ;;  %s400_s1 = inlined_call_operand.vmem [shape: f32[8,1], index: 1, kind: input, shape index: {}]   ;;  %s401_s2 = inlined_call_operand.vmem [shape: f32[8,1], index: 2, kind: input, shape index: {}]   ;;  %s402_s3 = inlined_call_operand.vmem [shape: f32[2,8,128], index: 3, kind: output, shape index: {}, may-alias: {0,3}]  }
   0x1   :  { %s371_s14 = smov 0  }
   0x2 LB: > { %s25_s15 = sadd.s32 1, %s340_s13  ;;  %p291_p0 = scmp.ge.s32.totalorder %s344_s14, 1  ;;  %s344_s14 = sphi %s371_s14, %s13_s14   ;;  %s340_s13 = sphi %s369_s13, %s404_s13   ;;  %s336_s12 = sphi %s367_s12, %s403_s12  }
   0x3   : > { %p27_p1 = scmp.ge.s32.totalorder %s25_s15, 2  ;;  %p155_p2 = scmp.lt.s32.totalorder %s344_s14, 3 }
   0x5   : > { %s406_s15 = smov (%p27_p1, %s25_s15), 0  ;;  %p156_p3 = pnand %p291_p0, %p155_p2 }
   0x6   : > { %p183_p4 = scmp.lt.s32.totalorder (!%p156_p3), %s336_s12, 1 }
   0x7   : > { %159 = sbr.rel (%p156_p3) target bundleno = 140 (0x8c), region = 32 }
   0xc   : > { %v198_v0 = vld [vmem:[%s400_s1] sm:$0xff]  ;;  %v346_v1 = vmov 0   ;;  %s408_s12 = smov (!%p183_p4, %s336_s12), 1 }
   0xd   : > { %321 = vset.pattern.permute.xlu0 %v346_v1  ;;  %v205_v2 = vld [vmem:[%s401_s2] sm:$0xff]  ;;  %s292_s20 = sshll.u32 %s408_s12, 3 }
   0xe   : > { %201 = vperm.xlu0 %321, %v198_v0   ;;  %s189_s23 = scalar_lea.vmem %s399_s0, %s292_s20  ;;  %s196_s26 = scalar_lea.vmem %s402_s3, %s292_s20 }
   0xf   : > { %v197_v4 = vld [vmem:[%s189_s23] sm:$0xff] }
  0x16   : > { %208 = vperm.xlu0 %321, %v205_v2  }
  0x80   : > { %v202_v3 = vpop.permute.xlu0 %201 }
  0x81   : > { %v204_v5 = vmul.f32 %v202_v3, %v197_v4 }
  0x88   : > { %v209_v6 = vpop.permute.xlu0 %208 }
  0x89   : > { %v211_v7 = vadd.f32 %v209_v6, %v204_v5 }
  0x8b   : > { %212 = vst [vmem:[%s196_s26] sm:$0xff] %v211_v7 }
  0x8c PF: > { %s13_s14 = sadd.s32 1, %s344_s14   ;;  %s403_s12 = smov %s340_s13 }
  0x8d   : > { %p10_p5 = scmp.ge.s32.totalorder %s13_s14, 4   ;;  %s404_s13 = smov %s406_s15 }
  0x8f   :  { %12 = sbr.rel (!%p10_p5) target bundleno = 2 (0x2), region = 62 }

// kernel: convnext_downsampling.2
= control target key start
LH: loop header
LB: loop body
LE: loop exit
PB: predicated region body
PF: predicated region fallthrough
CT: control target
= control target key end

     0   :  { %s449_s15 = smov 0   ;;  %s451_s16 = smov 0   ;;  %s504_s0 = inlined_call_operand.vmem [shape: f32[2,16,128], index: 0, kind: input, shape index: {}]   ;;  %s505_s1 = inlined_call_operand.vmem [shape: f32[8,16], index: 1, kind: input, shape index: {}]   ;;  %s506_s2 = inlined_call_operand.vmem [shape: f32[2,8,128], index: 2, kind: output, shape index: {0}]   ;;  %s507_s3 = inlined_call_operand.vmem [shape: f32[8,1], index: 3, kind: output, shape index: {1}]   ;;  %s508_s4 = inlined_call_operand.vmem [shape: f32[8,1], index: 4, kind: output, shape index: {2}]  }
   0x1   :  { %s453_s17 = smov 0  }
   0x2 LB: > { %s27_s18 = sadd.s32 1, %s417_s16  ;;  %p364_p0 = scmp.ge.s32.totalorder %s421_s17, 1  ;;  %s421_s17 = sphi %s453_s17, %s15_s17   ;;  %s417_s16 = sphi %s451_s16, %s510_s16   ;;  %s413_s15 = sphi %s449_s15, %s509_s15  }
   0x3   : > { %p29_p1 = scmp.ge.s32.totalorder %s27_s18, 2  ;;  %p176_p2 = scmp.lt.s32.totalorder %s421_s17, 3 }
   0x5   : > { %s512_s18 = smov (%p29_p1, %s27_s18), 0  ;;  %p177_p3 = pnand %p364_p0, %p176_p2 }
   0x6   : > { %p207_p4 = scmp.lt.s32.totalorder (!%p177_p3), %s413_s15, 1  ;;  %p222_p5 = scmp.eq.s32.totalorder (!%p177_p3), %s413_s15, 0 }
   0x7   : > { %180 = sbr.rel (%p177_p3) target bundleno = 274 (0x112), region = 28 }
   0xc   : > { %s208_s19 = scalar_select %p207_p4, %s413_s15, 1  ;;  %v226_v2 = vld [vmem:[%s505_s1] sm:$0xff]  ;;  %vm229_vm0 = vcmask 130048   ;;  %vm256_vm1 = vcmask (%p222_p5), 7168   ;;  %v423_v4 = vmov (%p222_p5), 0.0  }
   0xd   : > { %257 = vst.msk [vmem:[%s507_s3] sm:$0xff] (%p222_p5), %vm256_vm1, %v423_v4 }
   0xe   : > { %s372_s20 = sshll.u32 %s208_s19, 4  ;;  %s367_s26 = sshll.u32 %s208_s19, 3  ;;  %258 = vst.msk [vmem:[%s508_s4] sm:$0xff] (%p222_p5), %vm256_vm1, %v423_v4 }
   0xf   : > { %s214_s23 = scalar_lea.vmem %s504_s0, %s372_s20  ;;  %s221_s29 = scalar_lea.vmem %s506_s2, %s367_s26 }
  0x10   : > { %v228_v0 = vld [vmem:[%s214_s23 + $0x8] sm:$0xff]  ;;  %v227_v1 = vld [vmem:[%s214_s23] sm:$0xff] }
  0x11   : > { %247 = vmatpush.msra.mxu0 %v228_v0 }
  0x13   : > { %248 = vmatpush.msra.mxu0 %v227_v1 }
  0x14   : > { %369 = vmatmul.msk.f32.vlgmr.msra.gmra.mxu0 %vm229_vm0, %v226_v2 }
  0x8e   : > { %255 = sbr.rel (!%p222_p5) target bundleno = 147 (0x93), region = 32 }
  0x91   : > { %v250_v3 = vpop.f32.mrf.mxu0 }
  0x92   : > { %253 = vst [vmem:[%s221_s29] sm:$0xff] %v250_v3 }
  0x93 PF: > { %260 = vadd.xlane.f32.xlu0 %v250_v3  ;;  %v266_v5 = vmul.f32 %v250_v3, %v250_v3  ;;  %v259_v6 = vld [vmem:[%s507_s3] sm:$0xff]  ;;  %vm263_vm2 = vcmask 7168  }
  0x94   : > { %v265_v9 = vld [vmem:[%s508_s4] sm:$0xff] }
  0x9b   : > { %267 = vadd.xlane.f32.xlu0 %v266_v5 }
 0x106   : > { %v261_v7 = vpop.xlane.xlu0 %260 }
 0x107   : > { %v262_v8 = vadd.f32 %v261_v7, %v259_v6 }
 0x109   : > { %264 = vst.msk [vmem:[%s507_s3] sm:$0xff] %vm263_vm2, %v262_v8 }
 0x10e   : > { %v268_v10 = vpop.xlane.xlu0 %267 }
 0x10f   : > { %v269_v11 = vadd.f32 %v268_v10, %v265_v9 }
 0x111   : > { %270 = vst.msk [vmem:[%s508_s4] sm:$0xff] %vm263_vm2, %v269_v11 }
 0x112 PF: > { %s15_s17 = sadd.s32 1, %s421_s17   ;;  %s509_s15 = smov %s417_s16 }
 0x113   : > { %p12_p6 = scmp.ge.s32.totalorder %s15_s17, 4   ;;  %s510_s16 = smov %s512_s18 }
 0x115   :  { %14 = sbr.rel (!%p12_p6) target bundleno = 2 (0x2), region = 78 }

</bundles_post_ra>
